<compile_context>
chip_gen: v7x
topology: tpu7x:2x2x1
jax: 0.10.0
libtpu: 0.0.40
codegen_flags: <defaults>
</compile_context>

<pallas_src>
import math
import jax
import jax.numpy as jnp
import numpy as np
from jax.experimental import pallas as pl
from jax.experimental.pallas import tpu as pltpu

# ------------------------- hyper-parameters (small) -------------------------
B, L = 2, 8          # batch, sequence length
D = 32               # model dim
NL = 2               # number of layers
NH = 4               # query heads
NKV = 2              # kv heads
V = 64               # vocab size
DF = 64              # FFN hidden dim (hparam.Dh)
EPS = 1e-5
LM = 16              # max sequence length
DHEAD = D // NH      # 8
DKV = D * NKV // NH  # 16
REP = NH // NKV      # GQA repeat factor
BL = B * L           # folded token axis
VPAD = 128           # vocab padded to a full lane group (lane-dense stores)
NEG = -1e30          # finite "minus infinity" for masking
BF = jnp.bfloat16


# ------------------------------- kernel --------------------------------------
def _rmsnorm(x, w):
    ms = jnp.mean(x * x, axis=-1, keepdims=True)
    return x * jax.lax.rsqrt(ms + EPS) * w


def fused_forward_kernel(x_ref, norms_ref, wqkv_ref, wa_ref, wgu_ref, wd_ref,
                         wo_ref, cs_ref, mask_ref, sel_ref, o_ref):
    x = x_ref[...]                          # (BL, D) folded tokens, f32
    cos = cs_ref[:, :D]                     # (BL, D)
    sin = cs_ref[:, D:]                     # (BL, D) signed sin (-s, s, ...)
    mask = mask_ref[...]                    # (BL, NH*BL) tiled block-diag causal
    sel = sel_ref[...]                      # (NH*BL, D) 0/1 head selector
    selb = sel.astype(BF)                   # hoisted once (constant)

    for li in range(NL):                    # static, fully unrolled layer loop
        # ------------------------- attention -------------------------
        xn = _rmsnorm(x, norms_ref[2 * li:2 * li + 1, :])
        proj = jnp.dot(xn.astype(BF), wqkv_ref[li],
                       preferred_element_type=jnp.float32)      # (BL, 5D)
        # softmax scale + RoPE pair-swap + GQA expansion pre-folded in weights
        q = proj[:, 0 * D:1 * D] * cos + proj[:, 1 * D:2 * D] * sin
        k = proj[:, 2 * D:3 * D] * cos + proj[:, 3 * D:4 * D] * sin
        v = proj[:, 4 * D:5 * D]

        # Pack all heads into one block-diagonal operand along sublanes:
        # row r of k_big keeps only the lanes of head r // BL.
        k_big = (jnp.concatenate([k] * NH, axis=0) * sel).astype(BF)  # (NH*BL, D)
        v_big = (jnp.concatenate([v] * NH, axis=0) * sel).astype(BF)  # (NH*BL, D)

        # all-head scores in ONE matmul: s[:, h*BL:(h+1)*BL] = q_h @ k_h^T
        s = jax.lax.dot_general(q.astype(BF), k_big,
                                (((1,), (1,)), ((), ())),
                                preferred_element_type=jnp.float32)   # (BL, NH*BL)
        s = s + mask
        # single row-max across all heads is numerically safe here (every head
        # has an unmasked diagonal entry, so per-head maxima are within ~O(1)).
        m = jnp.max(s, axis=-1, keepdims=True)
        e = jnp.exp(s - m)
        eb = e.astype(BF)
        # PV in ONE matmul; per-head denominators via the selector matmul.
        u = jnp.dot(eb, v_big, preferred_element_type=jnp.float32)    # (BL, D)
        denom = jnp.dot(eb, selb, preferred_element_type=jnp.float32)  # (BL, D)
        attn = u * pl.reciprocal(denom, approx=True)                  # normalized
        ha = jnp.dot(attn.astype(BF), wa_ref[li],
                     preferred_element_type=jnp.float32) + x

        # ------------------------- SwiGLU FFN -------------------------
        hn = _rmsnorm(ha, norms_ref[2 * li + 1:2 * li + 2, :])
        gu = jnp.dot(hn.astype(BF), wgu_ref[li],
                     preferred_element_type=jnp.float32)              # (BL, 2*DF)
        hg = gu[:, :DF]
        hu = gu[:, DF:]
        hm = hg * jax.nn.sigmoid(hg) * hu
        x = jnp.dot(hm.astype(BF), wd_ref[li],
                    preferred_element_type=jnp.float32) + ha

    # ----------------- output head (padded, lane-dense store) -----------------
    xo = _rmsnorm(x, norms_ref[2 * NL:2 * NL + 1, :])
    o_ref[...] = jnp.dot(xo.astype(BF), wo_ref[...],
                         preferred_element_type=jnp.float32)


# ----------------------------- pallas wrapper --------------------------------
def pallas_forward(ti, prep):
    x = prep['emb'][ti].reshape(BL, D)      # embedding gather stays as JAX glue
    vmem = pl.BlockSpec(memory_space=pltpu.MemorySpace.VMEM)
    logits_pad = pl.pallas_call(
        fused_forward_kernel,
        out_shape=jax.ShapeDtypeStruct((BL, VPAD), jnp.float32),
        in_specs=[vmem] * 10,
        out_specs=vmem,
    )(x, prep['norms'], prep['wqkv'], prep['wa'], prep['wgu'], prep['wd'],
      prep['wo'], prep['cs'], prep['mask'], prep['sel'])
    return logits_pad[:, :V].reshape(B, L, V)


# ----------------------------- host-side setup --------------------------------
def make_rope_tables():
    half = DHEAD // 2
    theta = 1.0 / (10000.0 ** (np.arange(0, DHEAD, 2)[:half].astype(np.float32)
                               / DHEAD))
    pos = np.arange(LM, dtype=np.float32)
    freqs = np.outer(pos, theta)                       # (LM, half)
    cos = np.cos(freqs)[:L]                            # (L, half)
    sin = np.sin(freqs)[:L]
    cos_head = np.repeat(cos, 2, axis=-1)              # c0,c0,c1,c1,...
    sin_signed = np.stack([-sin, sin], axis=-1).reshape(L, DHEAD)  # -s0,s0,...
    cos_full = np.tile(cos_head, (1, NH))              # (L, D)
    sin_full = np.tile(sin_signed, (1, NH))
    cos_bl = np.tile(cos_full, (B, 1)).astype(np.float32)   # (BL, D)
    sin_bl = np.tile(sin_full, (B, 1)).astype(np.float32)
    cs = np.concatenate([cos_bl, sin_bl], axis=1)            # (BL, 2D) packed
    return jnp.asarray(cs), jnp.asarray(cos), jnp.asarray(sin)


def make_mask_tiled():
    r = np.arange(BL)
    same = (r[:, None] // L) == (r[None, :] // L)
    causal = (r[None, :] % L) <= (r[:, None] % L)
    m = np.where(same & causal, 0.0, NEG).astype(np.float32)  # (BL, BL)
    return jnp.asarray(np.tile(m, (1, NH)))                   # (BL, NH*BL)


def make_selector():
    r = np.arange(NH * BL)[:, None] // BL          # head index per sublane row
    c = np.arange(D)[None, :] // DHEAD             # head index per lane
    return jnp.asarray((r == c).astype(np.float32))  # (NH*BL, D)


def prepare(params, cs):
    """Stack/fuse per-layer weights; fold RoPE swap, GQA expansion, softmax scale."""
    scale = 1.0 / math.sqrt(DHEAD)
    swap = np.zeros((D, D), np.float32)
    idx = np.arange(D)
    swap[idx, idx ^ 1] = 1.0                       # adjacent-pair swap

    def expand_kv(w):                              # (D, DKV) -> (D, D)
        w3 = np.asarray(w).reshape(D, NKV, DHEAD)
        return np.repeat(w3, REP, axis=1).reshape(D, D)

    wqkv, wa, wgu, wd, norms = [], [], [], [], []
    for lp in params['layers']:
        wq = np.asarray(lp['wq']) * scale          # softmax scale folded into Q
        wqs = wq @ swap                            # RoPE pair-swap folded in
        wk = expand_kv(lp['wk'])                   # GQA expansion folded in
        wks = wk @ swap
        wv = expand_kv(lp['wv'])
        wqkv.append(np.concatenate([wq, wqs, wk, wks, wv], axis=1))   # (D, 5D)
        wa.append(np.asarray(lp['wa']))
        wgu.append(np.concatenate([np.asarray(lp['wg']),
                                   np.asarray(lp['wu'])], axis=1))    # (D, 2DF)
        wd.append(np.asarray(lp['wd']))
        norms.append(np.asarray(lp['anorm']).reshape(D))
        norms.append(np.asarray(lp['fnorm']).reshape(D))
    norms.append(np.asarray(params['onorm']).reshape(D))

    wo_pad = np.zeros((D, VPAD), np.float32)
    wo_pad[:, :V] = np.asarray(params['wo'])

    return dict(
        emb=params['emb'],
        norms=jnp.asarray(np.stack(norms)),                        # (2NL+1, D) f32
        wqkv=jnp.asarray(np.stack(wqkv), dtype=BF),                # (NL, D, 5D)
        wa=jnp.asarray(np.stack(wa), dtype=BF),                    # (NL, D, D)
        wgu=jnp.asarray(np.stack(wgu), dtype=BF),                  # (NL, D, 2DF)
        wd=jnp.asarray(np.stack(wd), dtype=BF),                    # (NL, DF, D)
        wo=jnp.asarray(wo_pad, dtype=BF),                          # (D, VPAD)
        cs=cs, mask=make_mask_tiled(), sel=make_selector(),
    )


def init_params(key):
    def nrm(k, shape):
        return jax.random.normal(k, shape, jnp.float32) * 0.02
    keys = jax.random.split(key, 2 + 7 * NL)
    params = {
        'emb': nrm(keys[0], (V, D)),
        'onorm': jnp.ones((1, D), jnp.float32),
        'wo': nrm(keys[1], (D, V)),
        'layers': [],
    }
    for li in range(NL):
        kk = keys[2 + 7 * li: 2 + 7 * (li + 1)]
        params['layers'].append({
            'anorm': jnp.ones((1, D), jnp.float32),
            'fnorm': jnp.ones((1, D), jnp.float32),
            'wq': nrm(kk[0], (D, D)),
            'wk': nrm(kk[1], (D, DKV)),
            'wv': nrm(kk[2], (D, DKV)),
            'wa': nrm(kk[3], (D, D)),
            'wg': nrm(kk[4], (D, DF)),
            'wu': nrm(kk[5], (D, DF)),
            'wd': nrm(kk[6], (DF, D)),
        })
    return params


# ------------------------------ reference -------------------------------------
def ref_forward(ti, params, cos, sin):
    """Plain-JAX reference mirroring the PyTorch module exactly (all f32)."""
    x = params['emb'][ti]
    cosb = cos.reshape(1, L, 1, DHEAD // 2)
    sinb = sin.reshape(1, L, 1, DHEAD // 2)
    mask = jnp.triu(jnp.full((1, 1, L, L), -jnp.inf, dtype=jnp.float32), k=1)

    def rms(a, w):
        return a * jax.lax.rsqrt(jnp.mean(a * a, -1, keepdims=True) + EPS) * w

    for lp in params['layers']:
        xn = rms(x, lp['anorm'][0])
        q = xn @ lp['wq']
        k = xn @ lp['wk']
        v = xn @ lp['wv']
        q1 = q.reshape(B, L, NH, DHEAD // 2, 2)
        k1 = k.reshape(B, L, NKV, DHEAD // 2, 2)
        v1 = v.reshape(B, L, NKV, DHEAD)
        qr, qi = q1[..., 0], q1[..., 1]
        kr, ki = k1[..., 0], k1[..., 1]
        qr1 = qr * cosb - qi * sinb
        qi1 = qr * sinb + qi * cosb
        kr1 = kr * cosb - ki * sinb
        ki1 = kr * sinb + ki * cosb
        q2 = jnp.stack([qr1, qi1], -1).reshape(B, L, NH, DHEAD)
        k2 = jnp.stack([kr1, ki1], -1).reshape(B, L, NKV, DHEAD)
        kx = jnp.repeat(k2, REP, axis=2)
        vx = jnp.repeat(v1, REP, axis=2)
        qt = q2.transpose(0, 2, 1, 3)
        kt = kx.transpose(0, 2, 1, 3)
        vt = vx.transpose(0, 2, 1, 3)
        a = jnp.einsum('bhqd,bhkd->bhqk', qt, kt) / math.sqrt(DHEAD) + mask
        p = jax.nn.softmax(a, axis=-1)
        sa = jnp.einsum('bhqk,bhkd->bhqd', p, vt)
        sac = sa.transpose(0, 2, 1, 3).reshape(B, L, D)
        ha = sac @ lp['wa'] + x
        hn = rms(ha, lp['fnorm'][0])
        hm = jax.nn.silu(hn @ lp['wg']) * (hn @ lp['wu'])
        x = hm @ lp['wd'] + ha
    xo = rms(x, params['onorm'][0])
    return xo @ params['wo']


# ---------------------------------- main --------------------------------------
if __name__ == "__main__":
    key = jax.random.PRNGKey(0)
    kp, kt = jax.random.split(key)
    params = init_params(kp)
    ti = jax.random.randint(kt, (B, L), 0, V, dtype=jnp.int32)

    cs, cos_raw, sin_raw = make_rope_tables()
    prep = prepare(params, cs)

    forward = jax.jit(pallas_forward)
    out = jax.block_until_ready(forward(ti, prep))

    ref = jax.block_until_ready(ref_forward(ti, params, cos_raw, sin_raw))
    np.testing.assert_allclose(np.asarray(out), np.asarray(ref),
                               rtol=2e-2, atol=2e-2)
    assert out.shape == (B, L, V)
    print("KERNEL_OK")
</pallas_src>

<mosaic_0001>
module attributes {stable_mosaic.version = 11 : i64} {
  func.func @fused_forward_kernel(%arg0: memref<16x32xf32, #tpu.memory_space<vmem>>, %arg1: memref<5x32xf32, #tpu.memory_space<vmem>>, %arg2: memref<2x32x160xbf16, #tpu.memory_space<vmem>>, %arg3: memref<2x32x32xbf16, #tpu.memory_space<vmem>>, %arg4: memref<2x32x128xbf16, #tpu.memory_space<vmem>>, %arg5: memref<2x64x32xbf16, #tpu.memory_space<vmem>>, %arg6: memref<32x128xbf16, #tpu.memory_space<vmem>>, %arg7: memref<16x64xf32, #tpu.memory_space<vmem>>, %arg8: memref<16x64xf32, #tpu.memory_space<vmem>>, %arg9: memref<64x32xf32, #tpu.memory_space<vmem>>, %arg10: memref<16x128xf32, #tpu.memory_space<vmem>>) attributes {dimension_semantics = [], scalar_prefetch = 0 : i64, scratch_operands = 0 : i64, tpu.core_type = #tpu.core_type<tc>} {
    %c0 = arith.constant 0 : index
    %c0_0 = arith.constant 0 : index
    %0 = vector.load %arg0[%c0, %c0_0] : memref<16x32xf32, #tpu.memory_space<vmem>>, vector<16x32xf32>
    %c0_1 = arith.constant 0 : index
    %c0_2 = arith.constant 0 : index
    %1 = vector.load %arg7[%c0_1, %c0_2] : memref<16x64xf32, #tpu.memory_space<vmem>>, vector<16x32xf32>
    %c0_3 = arith.constant 0 : index
    %c32 = arith.constant 32 : index
    %2 = vector.load %arg7[%c0_3, %c32] : memref<16x64xf32, #tpu.memory_space<vmem>>, vector<16x32xf32>
    %c0_4 = arith.constant 0 : index
    %c0_5 = arith.constant 0 : index
    %3 = vector.load %arg8[%c0_4, %c0_5] : memref<16x64xf32, #tpu.memory_space<vmem>>, vector<16x64xf32>
    %c0_6 = arith.constant 0 : index
    %c0_7 = arith.constant 0 : index
    %4 = vector.load %arg9[%c0_6, %c0_7] : memref<64x32xf32, #tpu.memory_space<vmem>>, vector<64x32xf32>
    %5 = arith.truncf %4 : vector<64x32xf32> to vector<64x32xbf16>
    %c0_8 = arith.constant 0 : index
    %c0_9 = arith.constant 0 : index
    %6 = vector.load %arg1[%c0_8, %c0_9] : memref<5x32xf32, #tpu.memory_space<vmem>>, vector<1x32xf32>
    %7 = arith.mulf %0, %0 : vector<16x32xf32>
    %cst = arith.constant dense<0.000000e+00> : vector<16xf32>
    %8 = vector.multi_reduction <add>, %7, %cst [1] : vector<16x32xf32> to vector<16xf32>
    %9 = vector.shape_cast %8 : vector<16xf32> to vector<16x1xf32>
    %cst_10 = arith.constant 3.200000e+01 : f32
    %10 = vector.broadcast %cst_10 : f32 to vector<16x1xf32>
    %11 = arith.divf %9, %10 : vector<16x1xf32>
    %cst_11 = arith.constant 9.99999974E-6 : f32
    %12 = vector.broadcast %cst_11 : f32 to vector<16x1xf32>
    %13 = arith.addf %11, %12 : vector<16x1xf32>
    %14 = math.rsqrt %13 : vector<16x1xf32>
    %15 = vector.broadcast %14 : vector<16x1xf32> to vector<16x32xf32>
    %16 = arith.mulf %0, %15 : vector<16x32xf32>
    %17 = vector.broadcast %6 : vector<1x32xf32> to vector<16x32xf32>
    %18 = arith.mulf %16, %17 : vector<16x32xf32>
    %19 = arith.truncf %18 : vector<16x32xf32> to vector<16x32xbf16>
    %c0_12 = arith.constant 0 : index
    %c0_13 = arith.constant 0 : index
    %c0_14 = arith.constant 0 : index
    %20 = vector.load %arg2[%c0_12, %c0_13, %c0_14] : memref<2x32x160xbf16, #tpu.memory_space<vmem>>, vector<1x32x160xbf16>
    %21 = vector.shape_cast %20 : vector<1x32x160xbf16> to vector<32x160xbf16>
    %cst_15 = arith.constant dense<0.000000e+00> : vector<16x160xf32>
    %22 = tpu.matmul %19, %21, %cst_15 {dimension_numbers = #tpu.dot_dimension_numbers<[1], [0], [0], [1], [0, 0, 1, 1], [], []>} : vector<16x32xbf16>, vector<32x160xbf16>, vector<16x160xf32> -> vector<16x160xf32>
    %23 = vector.extract_strided_slice %22 {offsets = [0, 0], sizes = [16, 32], strides = [1, 1]} : vector<16x160xf32> to vector<16x32xf32>
    %24 = arith.mulf %23, %1 : vector<16x32xf32>
    %25 = vector.extract_strided_slice %22 {offsets = [0, 32], sizes = [16, 32], strides = [1, 1]} : vector<16x160xf32> to vector<16x32xf32>
    %26 = arith.mulf %25, %2 : vector<16x32xf32>
    %27 = arith.addf %24, %26 : vector<16x32xf32>
    %28 = vector.extract_strided_slice %22 {offsets = [0, 64], sizes = [16, 32], strides = [1, 1]} : vector<16x160xf32> to vector<16x32xf32>
    %29 = arith.mulf %28, %1 : vector<16x32xf32>
    %30 = vector.extract_strided_slice %22 {offsets = [0, 96], sizes = [16, 32], strides = [1, 1]} : vector<16x160xf32> to vector<16x32xf32>
    %31 = arith.mulf %30, %2 : vector<16x32xf32>
    %32 = arith.addf %29, %31 : vector<16x32xf32>
    %33 = vector.extract_strided_slice %22 {offsets = [0, 128], sizes = [16, 32], strides = [1, 1]} : vector<16x160xf32> to vector<16x32xf32>
    %34 = tpu.concatenate %32, %32, %32, %32 in 0 : vector<16x32xf32>, vector<16x32xf32>, vector<16x32xf32>, vector<16x32xf32> -> vector<64x32xf32>
    %35 = arith.mulf %34, %4 : vector<64x32xf32>
    %36 = arith.truncf %35 : vector<64x32xf32> to vector<64x32xbf16>
    %37 = tpu.concatenate %33, %33, %33, %33 in 0 : vector<16x32xf32>, vector<16x32xf32>, vector<16x32xf32>, vector<16x32xf32> -> vector<64x32xf32>
    %38 = arith.mulf %37, %4 : vector<64x32xf32>
    %39 = arith.truncf %38 : vector<64x32xf32> to vector<64x32xbf16>
    %40 = arith.truncf %27 : vector<16x32xf32> to vector<16x32xbf16>
    %cst_16 = arith.constant dense<0.000000e+00> : vector<16x64xf32>
    %41 = tpu.matmul %40, %36, %cst_16 {dimension_numbers = #tpu.dot_dimension_numbers<[1], [1], [0], [0], [0, 0, 1, 0], [], []>} : vector<16x32xbf16>, vector<64x32xbf16>, vector<16x64xf32> -> vector<16x64xf32>
    %42 = arith.addf %41, %3 : vector<16x64xf32>
    %cst_17 = arith.constant dense<0xFF800000> : vector<16xf32>
    %43 = vector.multi_reduction <maximumf>, %42, %cst_17 [1] : vector<16x64xf32> to vector<16xf32>
    %44 = vector.shape_cast %43 : vector<16xf32> to vector<16x1xf32>
    %45 = vector.broadcast %44 : vector<16x1xf32> to vector<16x64xf32>
    %46 = arith.subf %42, %45 : vector<16x64xf32>
    %47 = math.exp %46 : vector<16x64xf32>
    %48 = arith.truncf %47 : vector<16x64xf32> to vector<16x64xbf16>
    %cst_18 = arith.constant dense<0.000000e+00> : vector<16x32xf32>
    %49 = tpu.matmul %48, %39, %cst_18 {dimension_numbers = #tpu.dot_dimension_numbers<[1], [0], [0], [1], [0, 0, 1, 1], [], []>} : vector<16x64xbf16>, vector<64x32xbf16>, vector<16x32xf32> -> vector<16x32xf32>
    %cst_19 = arith.constant dense<0.000000e+00> : vector<16x32xf32>
    %50 = tpu.matmul %48, %5, %cst_19 {dimension_numbers = #tpu.dot_dimension_numbers<[1], [0], [0], [1], [0, 0, 1, 1], [], []>} : vector<16x64xbf16>, vector<64x32xbf16>, vector<16x32xf32> -> vector<16x32xf32>
    %51 = tpu.reciprocal %50 {approx = true} : vector<16x32xf32> -> vector<16x32xf32>
    %52 = arith.mulf %49, %51 : vector<16x32xf32>
    %53 = arith.truncf %52 : vector<16x32xf32> to vector<16x32xbf16>
    %c0_20 = arith.constant 0 : index
    %c0_21 = arith.constant 0 : index
    %c0_22 = arith.constant 0 : index
    %54 = vector.load %arg3[%c0_20, %c0_21, %c0_22] : memref<2x32x32xbf16, #tpu.memory_space<vmem>>, vector<1x32x32xbf16>
    %55 = vector.shape_cast %54 : vector<1x32x32xbf16> to vector<32x32xbf16>
    %cst_23 = arith.constant dense<0.000000e+00> : vector<16x32xf32>
    %56 = tpu.matmul %53, %55, %cst_23 {dimension_numbers = #tpu.dot_dimension_numbers<[1], [0], [0], [1], [0, 0, 1, 1], [], []>} : vector<16x32xbf16>, vector<32x32xbf16>, vector<16x32xf32> -> vector<16x32xf32>
    %57 = arith.addf %56, %0 : vector<16x32xf32>
    %c1 = arith.constant 1 : index
    %c0_24 = arith.constant 0 : index
    %58 = vector.load %arg1[%c1, %c0_24] : memref<5x32xf32, #tpu.memory_space<vmem>>, vector<1x32xf32>
    %59 = arith.mulf %57, %57 : vector<16x32xf32>
    %cst_25 = arith.constant dense<0.000000e+00> : vector<16xf32>
    %60 = vector.multi_reduction <add>, %59, %cst_25 [1] : vector<16x32xf32> to vector<16xf32>
    %61 = vector.shape_cast %60 : vector<16xf32> to vector<16x1xf32>
    %cst_26 = arith.constant 3.200000e+01 : f32
    %62 = vector.broadcast %cst_26 : f32 to vector<16x1xf32>
    %63 = arith.divf %61, %62 : vector<16x1xf32>
    %cst_27 = arith.constant 9.99999974E-6 : f32
    %64 = vector.broadcast %cst_27 : f32 to vector<16x1xf32>
    %65 = arith.addf %63, %64 : vector<16x1xf32>
    %66 = math.rsqrt %65 : vector<16x1xf32>
    %67 = vector.broadcast %66 : vector<16x1xf32> to vector<16x32xf32>
    %68 = arith.mulf %57, %67 : vector<16x32xf32>
    %69 = vector.broadcast %58 : vector<1x32xf32> to vector<16x32xf32>
    %70 = arith.mulf %68, %69 : vector<16x32xf32>
    %71 = arith.truncf %70 : vector<16x32xf32> to vector<16x32xbf16>
    %c0_28 = arith.constant 0 : index
    %c0_29 = arith.constant 0 : index
    %c0_30 = arith.constant 0 : index
    %72 = vector.load %arg4[%c0_28, %c0_29, %c0_30] : memref<2x32x128xbf16, #tpu.memory_space<vmem>>, vector<1x32x128xbf16>
    %73 = vector.shape_cast %72 : vector<1x32x128xbf16> to vector<32x128xbf16>
    %cst_31 = arith.constant dense<0.000000e+00> : vector<16x128xf32>
    %74 = tpu.matmul %71, %73, %cst_31 {dimension_numbers = #tpu.dot_dimension_numbers<[1], [0], [0], [1], [0, 0, 1, 1], [], []>} : vector<16x32xbf16>, vector<32x128xbf16>, vector<16x128xf32> -> vector<16x128xf32>
    %75 = vector.extract_strided_slice %74 {offsets = [0, 0], sizes = [16, 64], strides = [1, 1]} : vector<16x128xf32> to vector<16x64xf32>
    %76 = vector.extract_strided_slice %74 {offsets = [0, 64], sizes = [16, 64], strides = [1, 1]} : vector<16x128xf32> to vector<16x64xf32>
    %77 = arith.negf %75 : vector<16x64xf32>
    %78 = math.exp %77 : vector<16x64xf32>
    %cst_32 = arith.constant 1.000000e+00 : f32
    %79 = vector.broadcast %cst_32 : f32 to vector<16x64xf32>
    %80 = arith.addf %79, %78 : vector<16x64xf32>
    %81 = arith.divf %79, %80 : vector<16x64xf32>
    %82 = arith.mulf %75, %81 : vector<16x64xf32>
    %83 = arith.mulf %82, %76 : vector<16x64xf32>
    %84 = arith.truncf %83 : vector<16x64xf32> to vector<16x64xbf16>
    %c0_33 = arith.constant 0 : index
    %c0_34 = arith.constant 0 : index
    %c0_35 = arith.constant 0 : index
    %85 = vector.load %arg5[%c0_33, %c0_34, %c0_35] : memref<2x64x32xbf16, #tpu.memory_space<vmem>>, vector<1x64x32xbf16>
    %86 = vector.shape_cast %85 : vector<1x64x32xbf16> to vector<64x32xbf16>
    %cst_36 = arith.constant dense<0.000000e+00> : vector<16x32xf32>
    %87 = tpu.matmul %84, %86, %cst_36 {dimension_numbers = #tpu.dot_dimension_numbers<[1], [0], [0], [1], [0, 0, 1, 1], [], []>} : vector<16x64xbf16>, vector<64x32xbf16>, vector<16x32xf32> -> vector<16x32xf32>
    %88 = arith.addf %87, %57 : vector<16x32xf32>
    %c2 = arith.constant 2 : index
    %c0_37 = arith.constant 0 : index
    %89 = vector.load %arg1[%c2, %c0_37] : memref<5x32xf32, #tpu.memory_space<vmem>>, vector<1x32xf32>
    %90 = arith.mulf %88, %88 : vector<16x32xf32>
    %cst_38 = arith.constant dense<0.000000e+00> : vector<16xf32>
    %91 = vector.multi_reduction <add>, %90, %cst_38 [1] : vector<16x32xf32> to vector<16xf32>
    %92 = vector.shape_cast %91 : vector<16xf32> to vector<16x1xf32>
    %cst_39 = arith.constant 3.200000e+01 : f32
    %93 = vector.broadcast %cst_39 : f32 to vector<16x1xf32>
    %94 = arith.divf %92, %93 : vector<16x1xf32>
    %cst_40 = arith.constant 9.99999974E-6 : f32
    %95 = vector.broadcast %cst_40 : f32 to vector<16x1xf32>
    %96 = arith.addf %94, %95 : vector<16x1xf32>
    %97 = math.rsqrt %96 : vector<16x1xf32>
    %98 = vector.broadcast %97 : vector<16x1xf32> to vector<16x32xf32>
    %99 = arith.mulf %88, %98 : vector<16x32xf32>
    %100 = vector.broadcast %89 : vector<1x32xf32> to vector<16x32xf32>
    %101 = arith.mulf %99, %100 : vector<16x32xf32>
    %102 = arith.truncf %101 : vector<16x32xf32> to vector<16x32xbf16>
    %c1_41 = arith.constant 1 : index
    %c0_42 = arith.constant 0 : index
    %c0_43 = arith.constant 0 : index
    %103 = vector.load %arg2[%c1_41, %c0_42, %c0_43] : memref<2x32x160xbf16, #tpu.memory_space<vmem>>, vector<1x32x160xbf16>
    %104 = vector.shape_cast %103 : vector<1x32x160xbf16> to vector<32x160xbf16>
    %cst_44 = arith.constant dense<0.000000e+00> : vector<16x160xf32>
    %105 = tpu.matmul %102, %104, %cst_44 {dimension_numbers = #tpu.dot_dimension_numbers<[1], [0], [0], [1], [0, 0, 1, 1], [], []>} : vector<16x32xbf16>, vector<32x160xbf16>, vector<16x160xf32> -> vector<16x160xf32>
    %106 = vector.extract_strided_slice %105 {offsets = [0, 0], sizes = [16, 32], strides = [1, 1]} : vector<16x160xf32> to vector<16x32xf32>
    %107 = arith.mulf %106, %1 : vector<16x32xf32>
    %108 = vector.extract_strided_slice %105 {offsets = [0, 32], sizes = [16, 32], strides = [1, 1]} : vector<16x160xf32> to vector<16x32xf32>
    %109 = arith.mulf %108, %2 : vector<16x32xf32>
    %110 = arith.addf %107, %109 : vector<16x32xf32>
    %111 = vector.extract_strided_slice %105 {offsets = [0, 64], sizes = [16, 32], strides = [1, 1]} : vector<16x160xf32> to vector<16x32xf32>
    %112 = arith.mulf %111, %1 : vector<16x32xf32>
    %113 = vector.extract_strided_slice %105 {offsets = [0, 96], sizes = [16, 32], strides = [1, 1]} : vector<16x160xf32> to vector<16x32xf32>
    %114 = arith.mulf %113, %2 : vector<16x32xf32>
    %115 = arith.addf %112, %114 : vector<16x32xf32>
    %116 = vector.extract_strided_slice %105 {offsets = [0, 128], sizes = [16, 32], strides = [1, 1]} : vector<16x160xf32> to vector<16x32xf32>
    %117 = tpu.concatenate %115, %115, %115, %115 in 0 : vector<16x32xf32>, vector<16x32xf32>, vector<16x32xf32>, vector<16x32xf32> -> vector<64x32xf32>
    %118 = arith.mulf %117, %4 : vector<64x32xf32>
    %119 = arith.truncf %118 : vector<64x32xf32> to vector<64x32xbf16>
    %120 = tpu.concatenate %116, %116, %116, %116 in 0 : vector<16x32xf32>, vector<16x32xf32>, vector<16x32xf32>, vector<16x32xf32> -> vector<64x32xf32>
    %121 = arith.mulf %120, %4 : vector<64x32xf32>
    %122 = arith.truncf %121 : vector<64x32xf32> to vector<64x32xbf16>
    %123 = arith.truncf %110 : vector<16x32xf32> to vector<16x32xbf16>
    %cst_45 = arith.constant dense<0.000000e+00> : vector<16x64xf32>
    %124 = tpu.matmul %123, %119, %cst_45 {dimension_numbers = #tpu.dot_dimension_numbers<[1], [1], [0], [0], [0, 0, 1, 0], [], []>} : vector<16x32xbf16>, vector<64x32xbf16>, vector<16x64xf32> -> vector<16x64xf32>
    %125 = arith.addf %124, %3 : vector<16x64xf32>
    %cst_46 = arith.constant dense<0xFF800000> : vector<16xf32>
    %126 = vector.multi_reduction <maximumf>, %125, %cst_46 [1] : vector<16x64xf32> to vector<16xf32>
    %127 = vector.shape_cast %126 : vector<16xf32> to vector<16x1xf32>
    %128 = vector.broadcast %127 : vector<16x1xf32> to vector<16x64xf32>
    %129 = arith.subf %125, %128 : vector<16x64xf32>
    %130 = math.exp %129 : vector<16x64xf32>
    %131 = arith.truncf %130 : vector<16x64xf32> to vector<16x64xbf16>
    %cst_47 = arith.constant dense<0.000000e+00> : vector<16x32xf32>
    %132 = tpu.matmul %131, %122, %cst_47 {dimension_numbers = #tpu.dot_dimension_numbers<[1], [0], [0], [1], [0, 0, 1, 1], [], []>} : vector<16x64xbf16>, vector<64x32xbf16>, vector<16x32xf32> -> vector<16x32xf32>
    %cst_48 = arith.constant dense<0.000000e+00> : vector<16x32xf32>
    %133 = tpu.matmul %131, %5, %cst_48 {dimension_numbers = #tpu.dot_dimension_numbers<[1], [0], [0], [1], [0, 0, 1, 1], [], []>} : vector<16x64xbf16>, vector<64x32xbf16>, vector<16x32xf32> -> vector<16x32xf32>
    %134 = tpu.reciprocal %133 {approx = true} : vector<16x32xf32> -> vector<16x32xf32>
    %135 = arith.mulf %132, %134 : vector<16x32xf32>
    %136 = arith.truncf %135 : vector<16x32xf32> to vector<16x32xbf16>
    %c1_49 = arith.constant 1 : index
    %c0_50 = arith.constant 0 : index
    %c0_51 = arith.constant 0 : index
    %137 = vector.load %arg3[%c1_49, %c0_50, %c0_51] : memref<2x32x32xbf16, #tpu.memory_space<vmem>>, vector<1x32x32xbf16>
    %138 = vector.shape_cast %137 : vector<1x32x32xbf16> to vector<32x32xbf16>
    %cst_52 = arith.constant dense<0.000000e+00> : vector<16x32xf32>
    %139 = tpu.matmul %136, %138, %cst_52 {dimension_numbers = #tpu.dot_dimension_numbers<[1], [0], [0], [1], [0, 0, 1, 1], [], []>} : vector<16x32xbf16>, vector<32x32xbf16>, vector<16x32xf32> -> vector<16x32xf32>
    %140 = arith.addf %139, %88 : vector<16x32xf32>
    %c3 = arith.constant 3 : index
    %c0_53 = arith.constant 0 : index
    %141 = vector.load %arg1[%c3, %c0_53] : memref<5x32xf32, #tpu.memory_space<vmem>>, vector<1x32xf32>
    %142 = arith.mulf %140, %140 : vector<16x32xf32>
    %cst_54 = arith.constant dense<0.000000e+00> : vector<16xf32>
    %143 = vector.multi_reduction <add>, %142, %cst_54 [1] : vector<16x32xf32> to vector<16xf32>
    %144 = vector.shape_cast %143 : vector<16xf32> to vector<16x1xf32>
    %cst_55 = arith.constant 3.200000e+01 : f32
    %145 = vector.broadcast %cst_55 : f32 to vector<16x1xf32>
    %146 = arith.divf %144, %145 : vector<16x1xf32>
    %cst_56 = arith.constant 9.99999974E-6 : f32
    %147 = vector.broadcast %cst_56 : f32 to vector<16x1xf32>
    %148 = arith.addf %146, %147 : vector<16x1xf32>
    %149 = math.rsqrt %148 : vector<16x1xf32>
    %150 = vector.broadcast %149 : vector<16x1xf32> to vector<16x32xf32>
    %151 = arith.mulf %140, %150 : vector<16x32xf32>
    %152 = vector.broadcast %141 : vector<1x32xf32> to vector<16x32xf32>
    %153 = arith.mulf %151, %152 : vector<16x32xf32>
    %154 = arith.truncf %153 : vector<16x32xf32> to vector<16x32xbf16>
    %c1_57 = arith.constant 1 : index
    %c0_58 = arith.constant 0 : index
    %c0_59 = arith.constant 0 : index
    %155 = vector.load %arg4[%c1_57, %c0_58, %c0_59] : memref<2x32x128xbf16, #tpu.memory_space<vmem>>, vector<1x32x128xbf16>
    %156 = vector.shape_cast %155 : vector<1x32x128xbf16> to vector<32x128xbf16>
    %cst_60 = arith.constant dense<0.000000e+00> : vector<16x128xf32>
    %157 = tpu.matmul %154, %156, %cst_60 {dimension_numbers = #tpu.dot_dimension_numbers<[1], [0], [0], [1], [0, 0, 1, 1], [], []>} : vector<16x32xbf16>, vector<32x128xbf16>, vector<16x128xf32> -> vector<16x128xf32>
    %158 = vector.extract_strided_slice %157 {offsets = [0, 0], sizes = [16, 64], strides = [1, 1]} : vector<16x128xf32> to vector<16x64xf32>
    %159 = vector.extract_strided_slice %157 {offsets = [0, 64], sizes = [16, 64], strides = [1, 1]} : vector<16x128xf32> to vector<16x64xf32>
    %160 = arith.negf %158 : vector<16x64xf32>
    %161 = math.exp %160 : vector<16x64xf32>
    %cst_61 = arith.constant 1.000000e+00 : f32
    %162 = vector.broadcast %cst_61 : f32 to vector<16x64xf32>
    %163 = arith.addf %162, %161 : vector<16x64xf32>
    %164 = arith.divf %162, %163 : vector<16x64xf32>
    %165 = arith.mulf %158, %164 : vector<16x64xf32>
    %166 = arith.mulf %165, %159 : vector<16x64xf32>
    %167 = arith.truncf %166 : vector<16x64xf32> to vector<16x64xbf16>
    %c1_62 = arith.constant 1 : index
    %c0_63 = arith.constant 0 : index
    %c0_64 = arith.constant 0 : index
    %168 = vector.load %arg5[%c1_62, %c0_63, %c0_64] : memref<2x64x32xbf16, #tpu.memory_space<vmem>>, vector<1x64x32xbf16>
    %169 = vector.shape_cast %168 : vector<1x64x32xbf16> to vector<64x32xbf16>
    %cst_65 = arith.constant dense<0.000000e+00> : vector<16x32xf32>
    %170 = tpu.matmul %167, %169, %cst_65 {dimension_numbers = #tpu.dot_dimension_numbers<[1], [0], [0], [1], [0, 0, 1, 1], [], []>} : vector<16x64xbf16>, vector<64x32xbf16>, vector<16x32xf32> -> vector<16x32xf32>
    %171 = arith.addf %170, %140 : vector<16x32xf32>
    %c4 = arith.constant 4 : index
    %c0_66 = arith.constant 0 : index
    %172 = vector.load %arg1[%c4, %c0_66] : memref<5x32xf32, #tpu.memory_space<vmem>>, vector<1x32xf32>
    %173 = arith.mulf %171, %171 : vector<16x32xf32>
    %cst_67 = arith.constant dense<0.000000e+00> : vector<16xf32>
    %174 = vector.multi_reduction <add>, %173, %cst_67 [1] : vector<16x32xf32> to vector<16xf32>
    %175 = vector.shape_cast %174 : vector<16xf32> to vector<16x1xf32>
    %cst_68 = arith.constant 3.200000e+01 : f32
    %176 = vector.broadcast %cst_68 : f32 to vector<16x1xf32>
    %177 = arith.divf %175, %176 : vector<16x1xf32>
    %cst_69 = arith.constant 9.99999974E-6 : f32
    %178 = vector.broadcast %cst_69 : f32 to vector<16x1xf32>
    %179 = arith.addf %177, %178 : vector<16x1xf32>
    %180 = math.rsqrt %179 : vector<16x1xf32>
    %181 = vector.broadcast %180 : vector<16x1xf32> to vector<16x32xf32>
    %182 = arith.mulf %171, %181 : vector<16x32xf32>
    %183 = vector.broadcast %172 : vector<1x32xf32> to vector<16x32xf32>
    %184 = arith.mulf %182, %183 : vector<16x32xf32>
    %185 = arith.truncf %184 : vector<16x32xf32> to vector<16x32xbf16>
    %c0_70 = arith.constant 0 : index
    %c0_71 = arith.constant 0 : index
    %186 = vector.load %arg6[%c0_70, %c0_71] : memref<32x128xbf16, #tpu.memory_space<vmem>>, vector<32x128xbf16>
    %cst_72 = arith.constant dense<0.000000e+00> : vector<16x128xf32>
    %187 = tpu.matmul %185, %186, %cst_72 {dimension_numbers = #tpu.dot_dimension_numbers<[1], [0], [0], [1], [0, 0, 1, 1], [], []>} : vector<16x32xbf16>, vector<32x128xbf16>, vector<16x128xf32> -> vector<16x128xf32>
    %c0_73 = arith.constant 0 : index
    %c0_74 = arith.constant 0 : index
    %188 = vector.load %arg10[%c0_73, %c0_74] : memref<16x128xf32, #tpu.memory_space<vmem>>, vector<16x128xf32>
    tpu.vector_store %arg10[%c0_73, %c0_74], %187 {strides = array<i32>} : memref<16x128xf32, #tpu.memory_space<vmem>>, vector<16x128xf32>,
    return
  }
}

</mosaic_0001>

<bundles_post_ra>
// kernel: pallas_forward.1
= control target key start
LH: loop header
LB: loop body
LE: loop exit
PB: predicated region body
PF: predicated region fallthrough
CT: control target
= control target key end

     0   :  { %vm57_vm0 = vcmask 261120   ;;  %v1657_v7 = vmov 0   ;;  %s1658_s26 = smov 64   ;;  %v1659_v28 = vmov 0.0   ;;  %s1660_s25 = smov 96   ;;  %vm1661_vm1 = vmmov 0   ;;  %s2173_s0 = inlined_call_operand.vmem [shape: f32[16,32], index: 0, kind: input, shape index: {}]   ;;  %s2174_s2 = inlined_call_operand.vmem [shape: bf16[2,32,160], index: 2, kind: input, shape index: {}]   ;;  %s2175_s7 = inlined_call_operand.vmem [shape: f32[16,64], index: 7, kind: input, shape index: {}]   ;;  %s2176_s1 = inlined_call_operand.vmem [shape: f32[5,32], index: 1, kind: input, shape index: {}]   ;;  %s2177_s9 = inlined_call_operand.vmem [shape: f32[64,32], index: 9, kind: input, shape index: {}]   ;;  %s2178_s8 = inlined_call_operand.vmem [shape: f32[16,64], index: 8, kind: input, shape index: {}]   ;;  %s2179_s3 = inlined_call_operand.vmem [shape: bf16[2,32,32], index: 3, kind: input, shape index: {}]   ;;  %s2180_s4 = inlined_call_operand.vmem [shape: bf16[2,32,128], index: 4, kind: input, shape index: {}]   ;;  %s2181_s5 = inlined_call_operand.vmem [shape: bf16[2,64,32], index: 5, kind: input, shape index: {}]   ;;  %s2182_s6 = inlined_call_operand.vmem [shape: bf16[32,128], index: 6, kind: input, shape index: {}]   ;;  %s2183_s10 = inlined_call_operand.vmem [shape: f32[16,128], index: 10, kind: output, shape index: {}]  }
   0x1   :  { %v1720_v0 = vld [vmem:[%s2173_s0] sm:$0xff]  ;;  %v1725_v1 = vld [vmem:[%s2173_s0 + $0x8] sm:$0xff]  ;;  %139 = vmatprep.mubr.bf16.mxu0 %v1657_v7  ;;  %v1578_v9 = vld [vmem:[%s2174_s2 + $0x14] ss:$8 sps:$4 sm:$0xff]   ;;  %1434 = vmatprep.subr.bf16.mxu1 %v1659_v28  ;;  %vm307_vm2 = vcmask 523264  }
   0x2   :  { %v55_v2 = vmul.f32 %v1720_v0, %v1720_v0  ;;  %v56_v3 = vmul.f32 %v1725_v1, %v1725_v1  ;;  %v1575_v6 = vld [vmem:[%s2174_s2 + $0x4] ss:$8 sps:$4 sm:$0xff]   ;;  %v1577_v8 = vld [vmem:[%s2174_s2] ss:$8 sps:$4 sm:$0xff]   ;;  %v1580_v10 = vld [vmem:[%s2174_s2 + $0x10] ss:$8 sps:$4 sm:$0xff]   ;;  %1442 = vmatprep.mubr.msk.bf16.mxu1 %vm1661_vm1, %v1659_v28 }
   0x3   :  { %107 = vmatprep.subr.bf16.mxu0 %v1575_v6  ;;  %v1749_v11 = vld [vmem:[%s2175_s7] sm:$0xff]  ;;  %v1756_v12 = vld [vmem:[%s2175_s7 + $0x8] sm:$0xff]  ;;  %v1780_v30 = vld [vmem:[%s2177_s9 + $0x10] sm:$0xff] }
   0x4   :  { %v58_v4 = vsel %vm57_vm0, %v55_v2, 0.0  ;;  %v61_v5 = vsel %vm57_vm0, %v56_v3, 0.0  ;;  %108 = vmatpush1.bf16.msra.mxu0 %v1577_v8  ;;  %164 = vrot.lane.b32.xlu1 %v1749_v11, %s1658_s26  ;;  %v1309_v22 = vld [vmem:[%s2176_s1] ss:$0 sm:$0xff]  ;;  %v1792_v33 = vld [vmem:[%s2177_s9 + $0x30] sm:$0xff]  ;;  %v1799_v35 = vld [vmem:[%s2177_s9 + $0x8] sm:$0xff] }
   0x5   :  { %59 = vadd.xlane.f32.xlu0 %v58_v4  ;;  %109 = vmatprep.subr.bf16.mxu0 %v1578_v9  ;;  %v1769_v27 = vld [vmem:[%s2177_s9] sm:$0xff]  ;;  %v1806_v38 = vld [vmem:[%s2177_s9 + $0x18] sm:$0xff]  ;;  %v1811_v39 = vld [vmem:[%s2177_s9 + $0x28] sm:$0xff] }
   0x6   :  { %v1787_v32 = vld [vmem:[%s2177_s9 + $0x20] sm:$0xff]  ;;  %v1816_v40 = vld [vmem:[%s2177_s9 + $0x38] sm:$0xff] }
   0x8   :  { %110 = vmatpush1.bf16.msra.mxu0 %v1580_v10  ;;  %166 = vrot.lane.b32.xlu1 %v1756_v12, %s1658_s26 }
   0x9   :  { %62 = vadd.xlane.f32.xlu0 %v61_v5  ;;  %1446 = vmatprep.subr.bf16.mxu0 %v1659_v28 }
   0xc   :  { %190 = vrot.lane.b32.xlu1 %v1769_v27, %s1658_s26 }
  0x76   :  { %v1775_v29 = vpop.permute.xlu1 %164 }
  0x7a   :  { %v1794_v34 = vpop.permute.xlu1 %166 }
  0x7e   :  { %v1850_v56 = vpop.permute.xlu1 %190 }
  0x92   :  { %v60_v13 = vpop.xlane.xlu0 %59 }
  0x93   :  { %v65_v14 = vmul.f32 0.03125, %v60_v13 }
  0x95   :  { %v67_v15 = vadd.f32 1e-05, %v65_v14 }
  0x96   :  { %v63_v16 = vpop.xlane.xlu0 %62 }
  0x97   :  { %1605 = vrsqrt.f32 %v67_v15  ;;  %v66_v17 = vmul.f32 0.03125, %v63_v16 }
  0x99   :  { %v68_v18 = vadd.f32 1e-05, %v66_v17 }
  0x9b   :  { %1607 = vrsqrt.f32 %v68_v18 }
  0xa1   :  { %v1606_v19 = vpop.eup %1605 }
  0xa2   :  { %v71_v20 = vmul.f32 %v1606_v19, %v1720_v0 }
  0xa4   :  { %v77_v24 = vmul.f32 %v1309_v22, %v71_v20 }
  0xa5   :  { %v1608_v21 = vpop.eup %1607 }
  0xa6   :  { %v72_v23 = vmul.f32 %v1608_v21, %v1725_v1 }
  0xa8   :  { %v78_v25 = vmul.f32 %v1309_v22, %v72_v23 }
  0xaa   :  { %v79_v26 = vpack.c.bf16 %v78_v25, %v77_v24 }
  0xac   :  { %1314 = vmatmul.mubr.msk.bf16.vlgmr.msra.gmra.mrb[0].mxu0 %vm57_vm0, %v79_v26 }
  0xad   :  { %1454 = vmatprep.mubr.msk.bf16.mxu0 %vm1661_vm1, %v1659_v28 }
 0x17f   :  { %v1782_v31 = vpop.f32.mrb[0].mxu0 }
 0x180   :  { %v170_v36 = vmul.f32 %v1775_v29, %v1782_v31  ;;  %v143_v37 = vpop.f32.mrb[1].mxu0  ;;  %v150_v20 = vmul.f32 %v1782_v31, %v1749_v11 }
 0x181   :  { %v226_v41 = vmul.f32 %v143_v37, %v1769_v27  ;;  %v1819_v42 = vpop.f32.mrb[2].mxu0  ;;  %v228_v43 = vmul.f32 %v143_v37, %v1780_v30  ;;  %v230_v44 = vmul.f32 %v143_v37, %v1787_v32  ;;  %v232_v45 = vmul.f32 %v143_v37, %v1792_v33 }
 0x182   :  { %v171_v46 = vmul.f32 %v1794_v34, %v1819_v42  ;;  %174 = vrot.lane.b32.xlu0 %v170_v36, %s1660_s25  ;;  %v147_v47 = vpop.f32.mrb[3].mxu0  ;;  %v151_v22 = vmul.f32 %v1819_v42, %v1756_v12 }
 0x183   :  { %v227_v48 = vmul.f32 %v147_v47, %v1799_v35  ;;  %v229_v49 = vmul.f32 %v147_v47, %v1806_v38  ;;  %v231_v50 = vmul.f32 %v147_v47, %v1811_v39  ;;  %v233_v51 = vmul.f32 %v147_v47, %v1816_v40  ;;  %v1902_v47 = vld [vmem:[%s2178_s8] sm:$0xff] }
 0x184   :  { %176 = vrot.lane.b32.xlu1 %v171_v46, %s1660_s25 }
 0x185   :  { %v234_v52 = vpack.c.bf16 %v227_v48, %v226_v41  ;;  %v235_v53 = vpack.c.bf16 %v229_v49, %v228_v43  ;;  %v236_v54 = vpack.c.bf16 %v231_v50, %v230_v44  ;;  %v237_v55 = vpack.c.bf16 %v233_v51, %v232_v45  ;;  %v1907_v49 = vld [vmem:[%s2178_s8 + $0x8] sm:$0xff] }
 0x186   :  { %200 = vrot.lane.b32.xlu0 %v1811_v39, %s1658_s26 }
 0x187   :  { %1447 = vmatpush3.bf16.msra.mxu0 %v234_v52 }
 0x188   :  { %192 = vrot.lane.b32.xlu1 %v1799_v35, %s1658_s26  ;;  %1448 = vmatprep.subr.bf16.mxu0 %v1659_v28 }
 0x18a   :  { %204 = vrot.lane.b32.xlu0 %v1816_v40, %s1658_s26 }
 0x18b   :  { %1449 = vmatpush3.bf16.msra.mxu0 %v235_v53 }
 0x18c   :  { %194 = vrot.lane.b32.xlu1 %v1780_v30, %s1658_s26  ;;  %1450 = vmatprep.subr.bf16.mxu0 %v1659_v28 }
 0x18f   :  { %1451 = vmatpush3.bf16.msra.mxu0 %v236_v54 }
 0x190   :  { %196 = vrot.lane.b32.xlu1 %v1806_v38, %s1658_s26  ;;  %1452 = vmatprep.subr.bf16.mxu0 %v1659_v28 }
 0x193   :  { %1453 = vmatpush3.bf16.msra.mxu0 %v237_v55 }
 0x194   :  { %198 = vrot.lane.b32.xlu1 %v1787_v32, %s1658_s26  ;;  %1458 = vmatprep.subr.bf16.mxu0 %v1659_v28 }
 0x198   :  { %202 = vrot.lane.b32.xlu1 %v1792_v33, %s1658_s26 }
 0x1f4   :  { %v175_v57 = vpop.permute.xlu0 %174 }
 0x1f5   :  { %v180_v59 = vadd.f32 %v175_v57, %v170_v36 }
 0x1f6   :  { %v177_v58 = vpop.permute.xlu1 %176 }
 0x1f7   :  { %v181_v60 = vadd.f32 %v177_v58, %v171_v46  ;;  %v214_v62 = vmul.f32 %v1850_v56, %v180_v59 }
 0x1f8   :  { %v1859_v4 = vpop.permute.xlu0 %200 }
 0x1f9   :  { %v219_v13 = vmul.f32 %v1859_v4, %v181_v60 }
 0x1fa   :  { %v1852_v61 = vpop.permute.xlu1 %192 }
 0x1fb   :  { %v215_v63 = vmul.f32 %v1852_v61, %v181_v60 }
 0x1fc   :  { %v1870_v15 = vpop.permute.xlu0 %204 }
 0x1fd   :  { %v222_v2 = vpack.c.bf16 %v215_v63, %v214_v62  ;;  %v221_v18 = vmul.f32 %v1870_v15, %v181_v60 }
 0x1fe   :  { %v1856_v3 = vpop.permute.xlu1 %194 }
 0x1ff   :  { %243 = vrot.lane.b32.xlu1 %v222_v2, %s1658_s26  ;;  %v216_v6 = vmul.f32 %v1856_v3, %v180_v59 }
 0x202   :  { %v1861_v5 = vpop.permute.xlu1 %196 }
 0x203   :  { %v217_v8 = vmul.f32 %v1861_v5, %v181_v60 }
 0x205   :  { %v223_v9 = vpack.c.bf16 %v217_v8, %v216_v6 }
 0x206   :  { %v1865_v10 = vpop.permute.xlu1 %198 }
 0x207   :  { %v218_v14 = vmul.f32 %v1865_v10, %v180_v59  ;;  %245 = vrot.lane.b32.xlu0 %v223_v9, %s1658_s26  ;;  %v1915_v9 = vpack.c.bf16 %v1799_v35, %v1769_v27 }
 0x209   :  { %v224_v16 = vpack.c.bf16 %v219_v13, %v218_v14  ;;  %v1921_v14 = vpack.c.bf16 %v1806_v38, %v1780_v30 }
 0x20a   :  { %v1872_v17 = vpop.permute.xlu1 %202 }
 0x20b   :  { %v220_v19 = vmul.f32 %v1872_v17, %v180_v59  ;;  %247 = vrot.lane.b32.xlu1 %v224_v16, %s1658_s26  ;;  %v1929_v16 = vpack.c.bf16 %v1811_v39, %v1787_v32 }
 0x20d   :  { %v225_v21 = vpack.c.bf16 %v221_v18, %v220_v19  ;;  %v1935_v18 = vpack.c.bf16 %v1816_v40, %v1792_v33  ;;  %v1581_v19 = vld [vmem:[%s2179_s3] sm:$0xff]  }
 0x20f   :  { %154 = vrot.lane.b32.xlu1 %v150_v20, %s1660_s25  ;;  %249 = vrot.lane.b32.xlu0 %v225_v21, %s1658_s26 }
 0x213   :  { %156 = vrot.lane.b32.xlu0 %v151_v22, %s1660_s25 }
 0x271   :  { %v244_v23 = vpop.permute.xlu1 %243 }
 0x272   :  { %v255_v24 = vsel %vm57_vm0, %v244_v23, 0 }
 0x273   :  { %1435 = vmatpush3.bf16.xpose.msra.mxu1 %v255_v24 }
 0x274   :  { %1436 = vmatprep.subr.bf16.mxu1 %v1659_v28 }
 0x279   :  { %v246_v25 = vpop.permute.xlu0 %245 }
 0x27a   :  { %v258_v26 = vsel %vm57_vm0, %v246_v25, 0 }
 0x27b   :  { %1437 = vmatpush3.bf16.xpose.msra.mxu1 %v258_v26 }
 0x27c   :  { %1438 = vmatprep.subr.bf16.mxu1 %v1659_v28 }
 0x27d   :  { %v248_v31 = vpop.permute.xlu1 %247 }
 0x27e   :  { %v261_v36 = vsel %vm57_vm0, %v248_v31, 0 }
 0x281   :  { %v250_v37 = vpop.permute.xlu0 %249  ;;  %v155_v43 = vpop.permute.xlu1 %154 }
 0x282   :  { %v264_v42 = vsel %vm57_vm0, %v250_v37, 0  ;;  %v160_v45 = vadd.f32 %v155_v43, %v150_v20  ;;  %v1582_v20 = vld [vmem:[%s2179_s3 + $0x8] sm:$0xff]  }
 0x283   :  { %1439 = vmatpush3.bf16.xpose.msra.mxu1 %v261_v36 }
 0x284   :  { %1440 = vmatprep.subr.bf16.mxu1 %v1659_v28 }
 0x285   :  { %v157_v41 = vpop.permute.xlu0 %156 }
 0x286   :  { %v161_v44 = vadd.f32 %v157_v41, %v151_v22 }
 0x288   :  { %v238_v46 = vpack.c.bf16 %v161_v44, %v160_v45 }
 0x28b   :  { %1441 = vmatpush3.bf16.xpose.msra.mxu1 %v264_v42 }
 0x28c   :  { %1470 = vmatprep.subr.bf16.mxu1 %v1659_v28 }
 0x292   :  { %1443 = vmatmul.mubr.msk.bf16.vlgmr.msra.gmra.mrb[0].mxu1 %vm57_vm0, %v238_v46 }
 0x293   :  { %1474 = vmatprep.mubr.msk.bf16.mxu1 %vm1661_vm1, %v1659_v28  ;;  %1471 = vmatpush3.bf16.msra.mxu1 %v1581_v19  ;;  %v1321_v19 = vld [vmem:[%s2176_s1 + $0x1] ss:$0 sm:$0xff] }
 0x294   :  { %1472 = vmatprep.subr.bf16.mxu1 %v1659_v28 }
 0x297   :  { %1473 = vmatpush3.bf16.msra.mxu1 %v1582_v20 }
 0x298   :  { %1486 = vmatprep.subr.bf16.mxu1 %v1659_v28 }
 0x365   :  { %v300_v48 = vpop.f32.mrb[0].mxu1 }
 0x366   :  { %v301_v50 = vadd.f32 %v300_v48, %v1902_v47  ;;  %v1444_v51 = vpop.f32.mrb[1].mxu1 }
 0x367   :  { %v303_v52 = vpop.f32.mrb[2].mxu1 }
 0x368   :  { %v304_v53 = vadd.f32 %v303_v52, %v1907_v49  ;;  %v1445_v54 = vpop.f32.mrb[3].mxu1  ;;  %v308_v55 = vsel %vm307_vm2, %v301_v50, -inf }
 0x369   :  { %309 = vmax.xlane.f32.xlu1 %v308_v55 }
 0x36a   :  { %v311_v57 = vsel %vm307_vm2, %v304_v53, -inf }
 0x36b   :  { %312 = vmax.xlane.f32.xlu0 %v311_v57 }
 0x3f6   :  { %v310_v58 = vpop.xlane.xlu1 %309 }
 0x3f7   :  { %v314_v59 = vsub.f32 %v301_v50, %v310_v58 }
 0x3f8   :  { %v313_v60 = vpop.xlane.xlu0 %312 }
 0x3f9   :  { %v316_v62 = vmul.f32 1.442695, %v314_v59  ;;  %v315_v63 = vsub.f32 %v304_v53, %v313_v60 }
 0x3fb   :  { %v318_v2 = vmul.f32 1.442695, %v315_v63  ;;  %1609 = vpow2.f32 %v316_v62 }
 0x3fd   :  { %1611 = vpow2.f32 %v318_v2 }
 0x405   :  { %v1610_v6 = vpop.eup %1609 }
 0x407   :  { %v1612_v8 = vpop.eup %1611 }
 0x408   :  { %v320_v13 = vpack.c.bf16 %v1612_v8, %v1610_v6 }
 0x40a   :  { %1455 = vmatmul.mubr.msk.bf16.vlgmr.msra.gmra.mrb[4].mxu0 %vm307_vm2, %v320_v13 }
 0x40b   :  { %1459 = vmatpush3.bf16.msra.mxu0 %v1915_v9  ;;  %1466 = vmatprep.mubr.msk.bf16.mxu0 %vm1661_vm1, %v1659_v28 }
 0x40c   :  { %1460 = vmatprep.subr.bf16.mxu0 %v1659_v28 }
 0x40f   :  { %1461 = vmatpush3.bf16.msra.mxu0 %v1921_v14 }
 0x410   :  { %1462 = vmatprep.subr.bf16.mxu0 %v1659_v28 }
 0x413   :  { %1463 = vmatpush3.bf16.msra.mxu0 %v1929_v16 }
 0x414   :  { %1464 = vmatprep.subr.bf16.mxu0 %v1659_v28 }
 0x417   :  { %1465 = vmatpush3.bf16.msra.mxu0 %v1935_v18 }
 0x418   :  { %1478 = vmatprep.subr.bf16.mxu0 %v1659_v28 }
 0x41a   :  { %1467 = vmatmul.mubr.msk.bf16.vlgmr.msra.gmra.mrb[8].mxu0 %vm307_vm2, %v320_v13 }
 0x41b   :  { %1482 = vmatprep.mubr.msk.bf16.mxu0 %vm1661_vm1, %v1659_v28 }
 0x4dd   :  { %v358_v21 = vpop.f32.mrb[4].mxu0 }
 0x4de   :  { %v1456_v22 = vpop.f32.mrb[5].mxu0 }
 0x4df   :  { %v361_v23 = vpop.f32.mrb[6].mxu0 }
 0x4e0   :  { %v1457_v24 = vpop.f32.mrb[7].mxu0 }
 0x4e1   :  { %v1585_v24 = vld [vmem:[%s2181_s5] sm:$0xff]  }
 0x4ed   :  { %v399_v25 = vpop.f32.mrb[8].mxu0 }
 0x4ee   :  { %1613 = vrcp.f32 %v399_v25  ;;  %v1468_v26 = vpop.f32.mrb[9].mxu0  ;;  %v1586_v25 = vld [vmem:[%s2181_s5 + $0x8] sm:$0xff]  }
 0x4ef   :  { %v402_v31 = vpop.f32.mrb[10].mxu0  ;;  %v1587_v26 = vld [vmem:[%s2181_s5 + $0x10] sm:$0xff]  }
 0x4f0   :  { %1615 = vrcp.f32 %v402_v31  ;;  %v1469_v36 = vpop.f32.mrb[11].mxu0 }
 0x4f8   :  { %v1614_v37 = vpop.eup %1613 }
 0x4f9   :  { %v408_v41 = vmul.f32 %v1614_v37, %v358_v21 }
 0x4fa   :  { %v1616_v42 = vpop.eup %1615 }
 0x4fb   :  { %v409_v43 = vmul.f32 %v1616_v42, %v361_v23 }
 0x4fd   :  { %v410_v44 = vpack.c.bf16 %v409_v43, %v408_v41 }
 0x4ff   :  { %1475 = vmatmul.mubr.msk.bf16.vlgmr.msra.gmra.mrb[4].mxu1 %vm57_vm0, %v410_v44 }
 0x500   :  { %1494 = vmatprep.mubr.msk.bf16.mxu1 %vm1661_vm1, %v1659_v28  ;;  %1487 = vmatpush3.bf16.msra.mxu1 %v1585_v24 }
 0x501   :  { %1488 = vmatprep.subr.bf16.mxu1 %v1659_v28 }
 0x504   :  { %1489 = vmatpush3.bf16.msra.mxu1 %v1586_v25 }
 0x505   :  { %1490 = vmatprep.subr.bf16.mxu1 %v1659_v28 }
 0x508   :  { %1491 = vmatpush3.bf16.msra.mxu1 %v1587_v26 }
 0x509   :  { %1492 = vmatprep.subr.bf16.mxu1 %v1659_v28 }
 0x5d2   :  { %v464_v45 = vpop.f32.mrb[4].mxu1 }
 0x5d3   :  { %v1955_v46 = vadd.f32 %v464_v45, %v1720_v0  ;;  %v1476_v48 = vpop.f32.mrb[5].mxu1  ;;  %v1583_v0 = vld [vmem:[%s2180_s4] sm:$0xff]  }
 0x5d4   :  { %v467_v50 = vpop.f32.mrb[6].mxu1  ;;  %1479 = vmatpush3.bf16.msra.mxu0 %v1583_v0 }
 0x5d5   :  { %v1958_v51 = vadd.f32 %v467_v50, %v1725_v1  ;;  %v1477_v52 = vpop.f32.mrb[7].mxu1  ;;  %v472_v53 = vmul.f32 %v1955_v46, %v1955_v46  ;;  %1480 = vmatprep.subr.bf16.mxu0 %v1659_v28  ;;  %v1584_v1 = vld [vmem:[%s2180_s4 + $0x8] sm:$0xff]  }
 0x5d7   :  { %v474_v54 = vsel %vm57_vm0, %v472_v53, 0.0  ;;  %v473_v55 = vmul.f32 %v1958_v51, %v1958_v51 }
 0x5d8   :  { %475 = vadd.xlane.f32.xlu0 %v474_v54  ;;  %1481 = vmatpush3.bf16.msra.mxu0 %v1584_v1 }
 0x5d9   :  { %v477_v57 = vsel %vm57_vm0, %v473_v55, 0.0 }
 0x5da   :  { %478 = vadd.xlane.f32.xlu1 %v477_v57 }
 0x665   :  { %v476_v58 = vpop.xlane.xlu0 %475 }
 0x666   :  { %v480_v59 = vmul.f32 0.03125, %v476_v58 }
 0x667   :  { %v479_v60 = vpop.xlane.xlu1 %478 }
 0x668   :  { %v482_v62 = vadd.f32 1e-05, %v480_v59  ;;  %v481_v63 = vmul.f32 0.03125, %v479_v60 }
 0x66a   :  { %1617 = vrsqrt.f32 %v482_v62  ;;  %v483_v2 = vadd.f32 1e-05, %v481_v63 }
 0x66c   :  { %1619 = vrsqrt.f32 %v483_v2 }
 0x674   :  { %v1618_v6 = vpop.eup %1617 }
 0x675   :  { %v486_v8 = vmul.f32 %v1618_v6, %v1955_v46 }
 0x676   :  { %v1620_v13 = vpop.eup %1619 }
 0x677   :  { %v487_v20 = vmul.f32 %v1620_v13, %v1958_v51  ;;  %v492_v21 = vmul.f32 %v1321_v19, %v486_v8 }
 0x679   :  { %v493_v22 = vmul.f32 %v1321_v19, %v487_v20 }
 0x67b   :  { %v494_v23 = vpack.c.bf16 %v493_v22, %v492_v21  ;;  %v1592_v22 = vld [vmem:[%s2174_s2 + $0x30] ss:$8 sps:$4 sm:$0xff]  }
 0x67d   :  { %1483 = vmatmul.mubr.msk.bf16.vlgmr.msra.gmra.mrb[12].mxu0 %vm57_vm0, %v494_v23  ;;  %v1594_v23 = vld [vmem:[%s2174_s2 + $0x34] ss:$8 sps:$4 sm:$0xff]  }
 0x67e   :  { %740 = vmatprep.mubr.bf16.mxu0 %v1657_v7  ;;  %v1588_v7 = vld [vmem:[%s2181_s5 + $0x18] sm:$0xff]  }
 0x67f   :  { %1493 = vmatpush3.bf16.msra.mxu1 %v1588_v7 }
 0x680   :  { %1510 = vmatprep.subr.bf16.mxu1 %v1659_v28 }
 0x750   :  { %v548_v31 = vpop.f32.mrb[12].mxu0 }
 0x751   :  { %571 = vrot.lane.b32.xlu0 %v548_v31, %s1658_s26  ;;  %v1484_v36 = vpop.f32.mrb[13].mxu0  ;;  %v1325_v42 = vmul.f32 -1.442695, %v548_v31 }
 0x752   :  { %v551_v37 = vpop.f32.mrb[14].mxu0 }
 0x753   :  { %573 = vrot.lane.b32.xlu1 %v551_v37, %s1658_s26  ;;  %v1485_v41 = vpop.f32.mrb[15].mxu0  ;;  %v1326_v43 = vmul.f32 -1.442695, %v551_v37  ;;  %1621 = vpow2.f32 %v1325_v42 }
 0x755   :  { %1623 = vpow2.f32 %v1326_v43  ;;  %v1332_v43 = vld [vmem:[%s2176_s1 + $0x2] ss:$0 sm:$0xff] }
 0x75d   :  { %v1622_v44 = vpop.eup %1621 }
 0x75e   :  { %v561_v48 = vadd.f32 1.0, %v1622_v44 }
 0x75f   :  { %v1624_v45 = vpop.eup %1623 }
 0x760   :  { %v562_v50 = vadd.f32 1.0, %v1624_v45  ;;  %1625 = vrcp.f32 %v561_v48 }
 0x762   :  { %1627 = vrcp.f32 %v562_v50 }
 0x76a   :  { %v1626_v52 = vpop.eup %1625 }
 0x76b   :  { %v567_v55 = vmul.f32 %v1626_v52, %v548_v31 }
 0x76c   :  { %v1628_v53 = vpop.eup %1627 }
 0x76d   :  { %v568_v57 = vmul.f32 %v1628_v53, %v551_v37 }
 0x7c3   :  { %v572_v54 = vpop.permute.xlu0 %571 }
 0x7c4   :  { %v577_v1 = vmul.f32 %v572_v54, %v567_v55 }
 0x7c5   :  { %v574_v0 = vpop.permute.xlu1 %573 }
 0x7c6   :  { %v578_v58 = vmul.f32 %v574_v0, %v568_v57 }
 0x7c8   :  { %v579_v59 = vpack.c.bf16 %v578_v58, %v577_v1 }
 0x7ca   :  { %1495 = vmatmul.mubr.msk.bf16.vlgmr.msra.gmra.mrb[8].mxu1 %vm307_vm2, %v579_v59 }
 0x7cb   :  { %1518 = vmatprep.mubr.msk.bf16.mxu1 %vm1661_vm1, %v1659_v28 }
 0x89d   :  { %v649_v60 = vpop.f32.mrb[8].mxu1 }
 0x89e   :  { %v2002_v62 = vadd.f32 %v649_v60, %v1955_v46  ;;  %v1496_v63 = vpop.f32.mrb[9].mxu1  ;;  %v1591_v46 = vld [vmem:[%s2174_s2 + $0x24] ss:$8 sps:$4 sm:$0xff]  }
 0x89f   :  { %v652_v2 = vpop.f32.mrb[10].mxu1  ;;  %708 = vmatprep.subr.bf16.mxu0 %v1591_v46 }
 0x8a0   :  { %v2005_v6 = vadd.f32 %v652_v2, %v1958_v51  ;;  %v1497_v8 = vpop.f32.mrb[11].mxu1  ;;  %v657_v13 = vmul.f32 %v2002_v62, %v2002_v62  ;;  %v1589_v51 = vld [vmem:[%s2174_s2 + $0x20] ss:$8 sps:$4 sm:$0xff]  }
 0x8a1   :  { %709 = vmatpush1.bf16.msra.mxu0 %v1589_v51 }
 0x8a2   :  { %v659_v19 = vsel %vm57_vm0, %v657_v13, 0.0  ;;  %v658_v20 = vmul.f32 %v2005_v6, %v2005_v6  ;;  %710 = vmatprep.subr.bf16.mxu0 %v1594_v23 }
 0x8a3   :  { %660 = vadd.xlane.f32.xlu1 %v659_v19 }
 0x8a4   :  { %v662_v21 = vsel %vm57_vm0, %v658_v20, 0.0 }
 0x8a5   :  { %663 = vadd.xlane.f32.xlu0 %v662_v21  ;;  %711 = vmatpush1.bf16.msra.mxu0 %v1592_v22 }
 0x8a6   :  { %1498 = vmatprep.subr.bf16.mxu0 %v1659_v28 }
 0x930   :  { %v661_v24 = vpop.xlane.xlu1 %660 }
 0x931   :  { %v665_v25 = vmul.f32 0.03125, %v661_v24 }
 0x932   :  { %v664_v26 = vpop.xlane.xlu0 %663 }
 0x933   :  { %v667_v7 = vadd.f32 1e-05, %v665_v25  ;;  %v666_v31 = vmul.f32 0.03125, %v664_v26 }
 0x935   :  { %1629 = vrsqrt.f32 %v667_v7  ;;  %v668_v36 = vadd.f32 1e-05, %v666_v31 }
 0x937   :  { %1631 = vrsqrt.f32 %v668_v36 }
 0x93f   :  { %v1630_v37 = vpop.eup %1629 }
 0x940   :  { %v671_v41 = vmul.f32 %v1630_v37, %v2002_v62 }
 0x941   :  { %v1632_v42 = vpop.eup %1631 }
 0x942   :  { %v672_v44 = vmul.f32 %v1632_v42, %v2005_v6  ;;  %v677_v45 = vmul.f32 %v1332_v43, %v671_v41 }
 0x944   :  { %v678_v48 = vmul.f32 %v1332_v43, %v672_v44 }
 0x946   :  { %v679_v50 = vpack.c.bf16 %v678_v48, %v677_v45 }
 0x948   :  { %1341 = vmatmul.mubr.msk.bf16.vlgmr.msra.gmra.mrb[16].mxu0 %vm57_vm0, %v679_v50 }
 0x949   :  { %1506 = vmatprep.mubr.msk.bf16.mxu0 %vm1661_vm1, %v1659_v28 }
 0xa1b   :  { %v742_v52 = vpop.f32.mrb[16].mxu0 }
 0xa1c   :  { %v763_v53 = vmul.f32 %v742_v52, %v1775_v29  ;;  %v744_v54 = vpop.f32.mrb[17].mxu0 }
 0xa1d   :  { %v787_v55 = vmul.f32 %v744_v54, %v1769_v27  ;;  %v746_v57 = vpop.f32.mrb[18].mxu0  ;;  %v789_v0 = vmul.f32 %v744_v54, %v1780_v30  ;;  %v791_v1 = vmul.f32 %v744_v54, %v1787_v32  ;;  %v793_v58 = vmul.f32 %v744_v54, %v1792_v33 }
 0xa1e   :  { %v764_v59 = vmul.f32 %v746_v57, %v1794_v34  ;;  %767 = vrot.lane.b32.xlu0 %v763_v53, %s1660_s25  ;;  %v748_v60 = vpop.f32.mrb[19].mxu0 }
 0xa1f   :  { %v788_v63 = vmul.f32 %v748_v60, %v1799_v35  ;;  %v790_v2 = vmul.f32 %v748_v60, %v1806_v38  ;;  %v792_v29 = vmul.f32 %v748_v60, %v1811_v39  ;;  %v794_v27 = vmul.f32 %v748_v60, %v1816_v40 }
 0xa20   :  { %769 = vrot.lane.b32.xlu1 %v764_v59, %s1660_s25 }
 0xa21   :  { %v795_v30 = vpack.c.bf16 %v788_v63, %v787_v55  ;;  %v796_v8 = vpack.c.bf16 %v790_v2, %v789_v0  ;;  %v797_v32 = vpack.c.bf16 %v792_v29, %v791_v1  ;;  %v798_v13 = vpack.c.bf16 %v794_v27, %v793_v58 }
 0xa23   :  { %1511 = vmatpush3.bf16.msra.mxu1 %v795_v30 }
 0xa24   :  { %1512 = vmatprep.subr.bf16.mxu1 %v1659_v28 }
 0xa27   :  { %1513 = vmatpush3.bf16.msra.mxu1 %v796_v8 }
 0xa28   :  { %1514 = vmatprep.subr.bf16.mxu1 %v1659_v28 }
 0xa2b   :  { %1515 = vmatpush3.bf16.msra.mxu1 %v797_v32 }
 0xa2c   :  { %1516 = vmatprep.subr.bf16.mxu1 %v1659_v28 }
 0xa2f   :  { %1517 = vmatpush3.bf16.msra.mxu1 %v798_v13 }
 0xa30   :  { %1522 = vmatprep.subr.bf16.mxu1 %v1659_v28 }
 0xa90   :  { %v768_v33 = vpop.permute.xlu0 %767 }
 0xa91   :  { %v773_v34 = vadd.f32 %v768_v33, %v763_v53 }
 0xa92   :  { %v770_v35 = vpop.permute.xlu1 %769 }
 0xa93   :  { %v774_v38 = vadd.f32 %v770_v35, %v764_v59  ;;  %v777_v39 = vmul.f32 %v773_v34, %v1856_v3  ;;  %v775_v19 = vmul.f32 %v773_v34, %v1850_v56  ;;  %v781_v23 = vmul.f32 %v773_v34, %v1872_v17 }
 0xa94   :  { %v779_v3 = vmul.f32 %v773_v34, %v1865_v10  ;;  %v751_v56 = vmul.f32 %v742_v52, %v1749_v11 }
 0xa95   :  { %v778_v40 = vmul.f32 %v774_v38, %v1861_v5  ;;  %v776_v20 = vmul.f32 %v774_v38, %v1852_v61  ;;  %v782_v51 = vmul.f32 %v774_v38, %v1870_v15  ;;  %v780_v22 = vmul.f32 %v774_v38, %v1859_v4 }
 0xa96   :  { %v752_v61 = vmul.f32 %v746_v57, %v1756_v12 }
 0xa97   :  { %v784_v21 = vpack.c.bf16 %v778_v40, %v777_v39  ;;  %v783_v46 = vpack.c.bf16 %v776_v20, %v775_v19  ;;  %v786_v24 = vpack.c.bf16 %v782_v51, %v781_v23  ;;  %v785_v5 = vpack.c.bf16 %v780_v22, %v779_v3 }
 0xa99   :  { %806 = vrot.lane.b32.xlu0 %v784_v21, %s1658_s26  ;;  %804 = vrot.lane.b32.xlu1 %v783_v46, %s1658_s26 }
 0xa9d   :  { %810 = vrot.lane.b32.xlu0 %v786_v24, %s1658_s26  ;;  %808 = vrot.lane.b32.xlu1 %v785_v5, %s1658_s26 }
 0xaa1   :  { %755 = vrot.lane.b32.xlu1 %v751_v56, %s1660_s25  ;;  %757 = vrot.lane.b32.xlu0 %v752_v61, %s1660_s25 }
 0xb0b   :  { %v805_v4 = vpop.permute.xlu1 %804  ;;  %v807_v10 = vpop.permute.xlu0 %806 }
 0xb0c   :  { %v816_v15 = vsel %vm57_vm0, %v805_v4, 0  ;;  %v819_v17 = vsel %vm57_vm0, %v807_v10, 0 }
 0xb0d   :  { %1499 = vmatpush3.bf16.xpose.msra.mxu0 %v816_v15 }
 0xb0e   :  { %1500 = vmatprep.subr.bf16.mxu0 %v1659_v28 }
 0xb0f   :  { %v809_v25 = vpop.permute.xlu1 %808  ;;  %v811_v12 = vpop.permute.xlu0 %810 }
 0xb10   :  { %v822_v11 = vsel %vm57_vm0, %v809_v25, 0  ;;  %v825_v31 = vsel %vm57_vm0, %v811_v12, 0 }
 0xb13   :  { %v756_v26 = vpop.permute.xlu1 %755  ;;  %v758_v7 = vpop.permute.xlu0 %757 }
 0xb14   :  { %v761_v36 = vadd.f32 %v756_v26, %v751_v56  ;;  %v762_v37 = vadd.f32 %v758_v7, %v752_v61  ;;  %v1599_v7 = vld [vmem:[%s2181_s5 + $0x20] sm:$0xff]  }
 0xb15   :  { %1501 = vmatpush3.bf16.xpose.msra.mxu0 %v819_v17  ;;  %v1352_v17 = vld [vmem:[%s2176_s1 + $0x3] ss:$0 sm:$0xff] }
 0xb16   :  { %1502 = vmatprep.subr.bf16.mxu0 %v1659_v28  ;;  %v799_v41 = vpack.c.bf16 %v762_v37, %v761_v36  ;;  %v1601_v36 = vld [vmem:[%s2181_s5 + $0x30] sm:$0xff]   ;;  %v1602_v37 = vld [vmem:[%s2181_s5 + $0x38] sm:$0xff]  }
 0xb1d   :  { %1503 = vmatpush3.bf16.xpose.msra.mxu0 %v822_v11 }
 0xb1e   :  { %1504 = vmatprep.subr.bf16.mxu0 %v1659_v28 }
 0xb25   :  { %1505 = vmatpush3.bf16.xpose.msra.mxu0 %v825_v31  ;;  %v1600_v31 = vld [vmem:[%s2181_s5 + $0x28] sm:$0xff]  }
 0xb26   :  { %1534 = vmatprep.subr.bf16.mxu0 %v1659_v28 }
 0xb2c   :  { %1507 = vmatmul.mubr.msk.bf16.vlgmr.msra.gmra.mrb[20].mxu0 %vm57_vm0, %v799_v41 }
 0xb2d   :  { %1538 = vmatprep.mubr.msk.bf16.mxu0 %vm1661_vm1, %v1659_v28 }
 0xbff   :  { %v861_v42 = vpop.f32.mrb[20].mxu0 }
 0xc00   :  { %v862_v43 = vadd.f32 %v861_v42, %v1902_v47  ;;  %v1508_v44 = vpop.f32.mrb[21].mxu0 }
 0xc01   :  { %v864_v45 = vpop.f32.mrb[22].mxu0 }
 0xc02   :  { %v865_v48 = vadd.f32 %v864_v45, %v1907_v49  ;;  %v1509_v50 = vpop.f32.mrb[23].mxu0  ;;  %v868_v52 = vsel %vm307_vm2, %v862_v43, -inf  ;;  %v1595_v49 = vld [vmem:[%s2179_s3 + $0x10] sm:$0xff]  }
 0xc03   :  { %869 = vmax.xlane.f32.xlu1 %v868_v52  ;;  %1535 = vmatpush3.bf16.msra.mxu0 %v1595_v49 }
 0xc04   :  { %v871_v53 = vsel %vm307_vm2, %v865_v48, -inf  ;;  %1536 = vmatprep.subr.bf16.mxu0 %v1659_v28 }
 0xc05   :  { %872 = vmax.xlane.f32.xlu0 %v871_v53 }
 0xc90   :  { %v870_v54 = vpop.xlane.xlu1 %869 }
 0xc91   :  { %v874_v55 = vsub.f32 %v862_v43, %v870_v54 }
 0xc92   :  { %v873_v57 = vpop.xlane.xlu0 %872 }
 0xc93   :  { %v876_v0 = vmul.f32 1.442695, %v874_v55  ;;  %v875_v1 = vsub.f32 %v865_v48, %v873_v57 }
 0xc95   :  { %v878_v58 = vmul.f32 1.442695, %v875_v1  ;;  %1633 = vpow2.f32 %v876_v0 }
 0xc97   :  { %1635 = vpow2.f32 %v878_v58 }
 0xc9f   :  { %v1634_v47 = vpop.eup %1633 }
 0xca1   :  { %v1636_v59 = vpop.eup %1635 }
 0xca2   :  { %v880_v60 = vpack.c.bf16 %v1636_v59, %v1634_v47 }
 0xca4   :  { %1519 = vmatmul.mubr.msk.bf16.vlgmr.msra.gmra.mrb[12].mxu1 %vm307_vm2, %v880_v60 }
 0xca5   :  { %1523 = vmatpush3.bf16.msra.mxu1 %v1915_v9  ;;  %1530 = vmatprep.mubr.msk.bf16.mxu1 %vm1661_vm1, %v1659_v28  ;;  %v1596_v9 = vld [vmem:[%s2179_s3 + $0x18] sm:$0xff]  }
 0xca6   :  { %1524 = vmatprep.subr.bf16.mxu1 %v1659_v28  ;;  %1537 = vmatpush3.bf16.msra.mxu0 %v1596_v9 }
 0xca7   :  { %1550 = vmatprep.subr.bf16.mxu0 %v1659_v28 }
 0xca9   :  { %1525 = vmatpush3.bf16.msra.mxu1 %v1921_v14 }
 0xcaa   :  { %1526 = vmatprep.subr.bf16.mxu1 %v1659_v28 }
 0xcad   :  { %1527 = vmatpush3.bf16.msra.mxu1 %v1929_v16 }
 0xcae   :  { %1528 = vmatprep.subr.bf16.mxu1 %v1659_v28 }
 0xcb1   :  { %1529 = vmatpush3.bf16.msra.mxu1 %v1935_v18 }
 0xcb2   :  { %1542 = vmatprep.subr.bf16.mxu1 %v1659_v28 }
 0xcb4   :  { %1531 = vmatmul.mubr.msk.bf16.vlgmr.msra.gmra.mrb[16].mxu1 %vm307_vm2, %v880_v60 }
 0xcb5   :  { %1546 = vmatprep.mubr.msk.bf16.mxu1 %vm1661_vm1, %v1659_v28 }
 0xd77   :  { %v918_v14 = vpop.f32.mrb[12].mxu1 }
 0xd78   :  { %v1520_v16 = vpop.f32.mrb[13].mxu1 }
 0xd79   :  { %v921_v18 = vpop.f32.mrb[14].mxu1 }
 0xd7a   :  { %v1521_v63 = vpop.f32.mrb[15].mxu1 }
 0xd87   :  { %v959_v2 = vpop.f32.mrb[16].mxu1 }
 0xd88   :  { %1637 = vrcp.f32 %v959_v2  ;;  %v1532_v29 = vpop.f32.mrb[17].mxu1 }
 0xd89   :  { %v962_v27 = vpop.f32.mrb[18].mxu1 }
 0xd8a   :  { %1639 = vrcp.f32 %v962_v27  ;;  %v1533_v30 = vpop.f32.mrb[19].mxu1 }
 0xd92   :  { %v1638_v8 = vpop.eup %1637 }
 0xd93   :  { %v968_v32 = vmul.f32 %v1638_v8, %v918_v14 }
 0xd94   :  { %v1640_v13 = vpop.eup %1639 }
 0xd95   :  { %v969_v33 = vmul.f32 %v1640_v13, %v921_v18  ;;  %v1604_v13 = vld [vmem:[%s2182_s6 + $0x8] sm:$0xff]  }
 0xd97   :  { %v970_v34 = vpack.c.bf16 %v969_v33, %v968_v32  ;;  %v1603_v32 = vld [vmem:[%s2182_s6] sm:$0xff]  }
 0xd99   :  { %1539 = vmatmul.mubr.msk.bf16.vlgmr.msra.gmra.mrb[24].mxu0 %vm57_vm0, %v970_v34 }
 0xd9a   :  { %1558 = vmatprep.mubr.msk.bf16.mxu0 %vm1661_vm1, %v1659_v28  ;;  %1551 = vmatpush3.bf16.msra.mxu0 %v1599_v7 }
 0xd9b   :  { %1552 = vmatprep.subr.bf16.mxu0 %v1659_v28 }
 0xd9e   :  { %1553 = vmatpush3.bf16.msra.mxu0 %v1600_v31 }
 0xd9f   :  { %1554 = vmatprep.subr.bf16.mxu0 %v1659_v28 }
 0xda2   :  { %1555 = vmatpush3.bf16.msra.mxu0 %v1601_v36 }
 0xda3   :  { %1556 = vmatprep.subr.bf16.mxu0 %v1659_v28 }
 0xda6   :  { %1557 = vmatpush3.bf16.msra.mxu0 %v1602_v37 }
 0xe6c   :  { %v1025_v35 = vpop.f32.mrb[24].mxu0 }
 0xe6d   :  { %v2107_v38 = vadd.f32 %v1025_v35, %v2002_v62  ;;  %v1540_v39 = vpop.f32.mrb[25].mxu0  ;;  %v1597_v62 = vld [vmem:[%s2180_s4 + $0x10] sm:$0xff]  }
 0xe6e   :  { %v1028_v40 = vpop.f32.mrb[26].mxu0  ;;  %1543 = vmatpush3.bf16.msra.mxu1 %v1597_v62 }
 0xe6f   :  { %v2110_v19 = vadd.f32 %v1028_v40, %v2005_v6  ;;  %v1541_v20 = vpop.f32.mrb[27].mxu0  ;;  %v1033_v21 = vmul.f32 %v2107_v38, %v2107_v38  ;;  %1544 = vmatprep.subr.bf16.mxu1 %v1659_v28  ;;  %v1598_v6 = vld [vmem:[%s2180_s4 + $0x18] sm:$0xff]  }
 0xe71   :  { %v1035_v46 = vsel %vm57_vm0, %v1033_v21, 0.0  ;;  %v1034_v51 = vmul.f32 %v2110_v19, %v2110_v19 }
 0xe72   :  { %1036 = vadd.xlane.f32.xlu0 %v1035_v46  ;;  %1545 = vmatpush3.bf16.msra.mxu1 %v1598_v6 }
 0xe73   :  { %v1038_v22 = vsel %vm57_vm0, %v1034_v51, 0.0  ;;  %1562 = vmatprep.subr.bf16.mxu1 %v1659_v28 }
 0xe74   :  { %1039 = vadd.xlane.f32.xlu1 %v1038_v22 }
 0xeff   :  { %v1037_v23 = vpop.xlane.xlu0 %1036 }
 0xf00   :  { %v1041_v3 = vmul.f32 0.03125, %v1037_v23 }
 0xf01   :  { %v1040_v24 = vpop.xlane.xlu1 %1039 }
 0xf02   :  { %v1043_v5 = vadd.f32 1e-05, %v1041_v3  ;;  %v1042_v56 = vmul.f32 0.03125, %v1040_v24 }
 0xf04   :  { %1641 = vrsqrt.f32 %v1043_v5  ;;  %v1044_v61 = vadd.f32 1e-05, %v1042_v56 }
 0xf06   :  { %1643 = vrsqrt.f32 %v1044_v61 }
 0xf0e   :  { %v1642_v4 = vpop.eup %1641 }
 0xf0f   :  { %v1047_v15 = vmul.f32 %v1642_v4, %v2107_v38 }
 0xf10   :  { %v1644_v10 = vpop.eup %1643 }
 0xf11   :  { %v1048_v25 = vmul.f32 %v1644_v10, %v2110_v19  ;;  %v1053_v11 = vmul.f32 %v1352_v17, %v1047_v15 }
 0xf13   :  { %v1054_v12 = vmul.f32 %v1352_v17, %v1048_v25 }
 0xf15   :  { %v1055_v26 = vpack.c.bf16 %v1054_v12, %v1053_v11 }
 0xf17   :  { %1547 = vmatmul.mubr.msk.bf16.vlgmr.msra.gmra.mrb[20].mxu1 %vm57_vm0, %v1055_v26 }
 0xf18   :  { %1566 = vmatprep.mubr.msk.bf16.mxu1 %vm1661_vm1, %v1659_v28  ;;  %1563 = vmatpush3.bf16.msra.mxu1 %v1603_v32 }
 0xf19   :  { %1564 = vmatprep.subr.bf16.mxu1 %v1659_v28  ;;  %v1375_v28 = vld [vmem:[%s2176_s1 + $0x4] ss:$0 sm:$0xff] }
 0xf1c   :  { %1565 = vmatpush3.bf16.msra.mxu1 %v1604_v13 }
 0xfea   :  { %v1110_v41 = vpop.f32.mrb[20].mxu1 }
 0xfeb   :  { %1133 = vrot.lane.b32.xlu0 %v1110_v41, %s1658_s26  ;;  %v1548_v42 = vpop.f32.mrb[21].mxu1  ;;  %v1360_v45 = vmul.f32 -1.442695, %v1110_v41 }
 0xfec   :  { %v1113_v43 = vpop.f32.mrb[22].mxu1 }
 0xfed   :  { %1135 = vrot.lane.b32.xlu1 %v1113_v43, %s1658_s26  ;;  %v1549_v44 = vpop.f32.mrb[23].mxu1  ;;  %v1361_v48 = vmul.f32 -1.442695, %v1113_v43  ;;  %1645 = vpow2.f32 %v1360_v45 }
 0xfef   :  { %1647 = vpow2.f32 %v1361_v48 }
 0xff7   :  { %v1646_v50 = vpop.eup %1645 }
 0xff8   :  { %v1123_v53 = vadd.f32 1.0, %v1646_v50 }
 0xff9   :  { %v1648_v52 = vpop.eup %1647 }
 0xffa   :  { %v1124_v54 = vadd.f32 1.0, %v1648_v52  ;;  %1649 = vrcp.f32 %v1123_v53 }
 0xffc   :  { %1651 = vrcp.f32 %v1124_v54 }
0x1004   :  { %v1650_v55 = vpop.eup %1649 }
0x1005   :  { %v1129_v1 = vmul.f32 %v1650_v55, %v1110_v41 }
0x1006   :  { %v1652_v57 = vpop.eup %1651 }
0x1007   :  { %v1130_v58 = vmul.f32 %v1652_v57, %v1113_v43 }
0x105d   :  { %v1134_v0 = vpop.permute.xlu0 %1133 }
0x105e   :  { %v1139_v59 = vmul.f32 %v1134_v0, %v1129_v1 }
0x105f   :  { %v1136_v47 = vpop.permute.xlu1 %1135 }
0x1060   :  { %v1140_v60 = vmul.f32 %v1136_v47, %v1130_v58 }
0x1062   :  { %v1141_v49 = vpack.c.bf16 %v1140_v60, %v1139_v59 }
0x1064   :  { %1559 = vmatmul.mubr.msk.bf16.vlgmr.msra.gmra.mrb[28].mxu0 %vm307_vm2, %v1141_v49 }
0x1137   :  { %v1212_v9 = vpop.f32.mrb[28].mxu0 }
0x1138   :  { %v1213_v14 = vadd.f32 %v1212_v9, %v2107_v38  ;;  %v1560_v16 = vpop.f32.mrb[29].mxu0 }
0x1139   :  { %v1215_v18 = vpop.f32.mrb[30].mxu0 }
0x113a   :  { %v1216_v63 = vadd.f32 %v1215_v18, %v2110_v19  ;;  %v1561_v2 = vpop.f32.mrb[31].mxu0  ;;  %v1220_v29 = vmul.f32 %v1213_v14, %v1213_v14 }
0x113c   :  { %v1222_v27 = vsel %vm57_vm0, %v1220_v29, 0.0  ;;  %v1221_v30 = vmul.f32 %v1216_v63, %v1216_v63 }
0x113d   :  { %1223 = vadd.xlane.f32.xlu1 %v1222_v27 }
0x113e   :  { %v1225_v8 = vsel %vm57_vm0, %v1221_v30, 0.0 }
0x113f   :  { %1226 = vadd.xlane.f32.xlu0 %v1225_v8 }
0x11ca   :  { %v1224_v33 = vpop.xlane.xlu1 %1223 }
0x11cb   :  { %v1228_v34 = vmul.f32 0.03125, %v1224_v33 }
0x11cc   :  { %v1227_v35 = vpop.xlane.xlu0 %1226 }
0x11cd   :  { %v1230_v38 = vadd.f32 1e-05, %v1228_v34  ;;  %v1229_v39 = vmul.f32 0.03125, %v1227_v35 }
0x11cf   :  { %1653 = vrsqrt.f32 %v1230_v38  ;;  %v1231_v40 = vadd.f32 1e-05, %v1229_v39 }
0x11d1   :  { %1655 = vrsqrt.f32 %v1231_v40 }
0x11d9   :  { %v1654_v19 = vpop.eup %1653 }
0x11da   :  { %v1234_v20 = vmul.f32 %v1654_v19, %v1213_v14 }
0x11db   :  { %v1656_v21 = vpop.eup %1655 }
0x11dc   :  { %v1235_v46 = vmul.f32 %v1656_v21, %v1216_v63  ;;  %v1240_v51 = vmul.f32 %v1375_v28, %v1234_v20 }
0x11de   :  { %v1241_v22 = vmul.f32 %v1375_v28, %v1235_v46 }
0x11e0   :  { %v1242_v62 = vpack.c.bf16 %v1241_v22, %v1240_v51 }
0x11e2   :  { %1567 = vmatmul.mubr.msk.bf16.vlgmr.msra.gmra.mrb[24].mxu1 %vm57_vm0, %v1242_v62 }
0x12b5   :  { %v1296_v6 = vpop.f32.mrb[24].mxu1 }
0x12b6   :  { %1303 = vst [vmem:[%s2183_s10] sm:$0xff] %v1296_v6  ;;  %v1568_v23 = vpop.f32.mrb[25].mxu1 }
0x12b7   :  { %v1299_v3 = vpop.f32.mrb[26].mxu1 }
0x12b8   :  { %1304 = vst [vmem:[%s2183_s10 + $0x8] sm:$0xff] %v1299_v3  ;;  %v1569_v24 = vpop.f32.mrb[27].mxu1 }

</bundles_post_ra>
